<compile_context>
chip_gen: v7x
topology: tpu7x:2x2x1
jax: 0.10.0
libtpu: 0.0.40
codegen_flags: <defaults>
</compile_context>

<pallas_src>
import functools

import jax
import jax.numpy as jnp
from jax.experimental import pallas as pl
from jax.experimental.pallas import tpu as pltpu


# ---------------------------------------------------------------------------
# Fused Pallas kernel: edge features + all GNN layers + residual
# ---------------------------------------------------------------------------
_PER_LAYER = 10   # (W1_static, W1_norm, W1_dir, b1, gamma, beta, W_root, bias, R, G)


def gnn_block_kernel(*refs, n_layers, residual):
    v_ref, ea_ref, ssrc_ref, sdiff_ref, amean_ref = refs[:5]
    p_refs = refs[5:5 + _PER_LAYER * n_layers]
    out_ref = refs[5 + _PER_LAYER * n_layers]

    v0 = v_ref[...]                       # (N, D0)  block input (vres)
    ea = ea_ref[...]                      # (E, 2)   static edge attrs
    s_src = ssrc_ref[...]                 # (E, N)   one-hot src gather
    a_mean = amean_ref[...]               # (N, E)   scatter-mean operator

    # ---- edge geometry, computed once ('skip' dynamic_efeats) --------------
    # d = v0[dst] - v0[src] via a single (S_dst - S_src) @ v0 matmul.
    d = jnp.dot(sdiff_ref[...], v0, preferred_element_type=jnp.float32)      # (E, D0)
    norm = jnp.sqrt(jnp.sum(d * d, axis=1, keepdims=True))                   # (E, 1)
    unit = d / (norm + 1e-5)                                                  # (E, D0)

    inv_e_count = 1.0 / ea.shape[0]       # static BN batch size (num edges)

    x = v0
    for l in range(n_layers):
        (w1s_ref, w1n_ref, w1d_ref, b1_ref, gamma_ref, beta_ref,
         wroot_ref, bias_ref, r_ref, g_ref) = \
            p_refs[_PER_LAYER * l:_PER_LAYER * (l + 1)]

        # -- edge network: Linear, with W1 split over the concat pieces ------
        #    e = [ea, norm, unit];  e @ W1 == ea@W1s + norm*W1n + unit@W1d
        h = (jnp.dot(ea, w1s_ref[...], preferred_element_type=jnp.float32)
             + norm * w1n_ref[...]
             + jnp.dot(unit, w1d_ref[...], preferred_element_type=jnp.float32)
             + b1_ref[...])                                                   # (E, in*out)

        # -- BatchNorm1d (training / batch stats), single pass ---------------
        s1 = jnp.sum(h, axis=0, keepdims=True)
        s2 = jnp.sum(h * h, axis=0, keepdims=True)
        mu = s1 * inv_e_count
        var = s2 * inv_e_count - mu * mu                                      # biased var
        h = (h - mu) * jax.lax.rsqrt(var + 1e-5)
        w_e = jnp.tanh(h * gamma_ref[...] + beta_ref[...])                    # (E, in*out)

        # -- NNConv message: msg[e,o] = sum_i x[src[e],i] * W_e[e, i*out+o] ---
        #    (all on the MXU: gather, expansion with R, group-sum with G)
        x_src = jnp.dot(s_src, x, preferred_element_type=jnp.float32)         # (E, in)
        x_rep = jnp.dot(x_src, r_ref[...], preferred_element_type=jnp.float32)  # (E, in*out)
        msg = jnp.dot(x_rep * w_e, g_ref[...],
                      preferred_element_type=jnp.float32)                     # (E, out)

        # -- mean aggregation + root weight + bias + LeakyReLU ----------------
        agg = jnp.dot(a_mean, msg, preferred_element_type=jnp.float32)        # (N, out)
        out = (agg
               + jnp.dot(x, wroot_ref[...], preferred_element_type=jnp.float32)
               + bias_ref[...])
        x = jnp.where(out > 0, out, 0.01 * out)

    if residual:
        x = x + v0
    out_ref[...] = x


# ---------------------------------------------------------------------------
# Wrapper
# ---------------------------------------------------------------------------
def gnn_block_pallas(v, ea2, S_src, S_diff, A_mean, kernel_params, residual=True):
    N, D0 = v.shape
    E = ea2.shape[0]
    layer_dims = tuple((p[6].shape[0], p[6].shape[1]) for p in kernel_params)  # W_root shapes
    out_f_final = layer_dims[-1][1]
    flat = [a for p in kernel_params for a in p]

    # rough scheduler hint
    flops = 2 * E * N * D0
    trans = 0
    for in_f, o_f in layer_dims:
        F = in_f * o_f
        flops += 2 * E * (2 * F + D0 * F + N * in_f + in_f * F + F * o_f)
        flops += 2 * N * (E * o_f + in_f * o_f)
        trans += E * F
    nbytes = sum(int(a.size) * a.dtype.itemsize
                 for a in [v, ea2, S_src, S_diff, A_mean] + flat)
    nbytes += N * out_f_final * 4

    kern = functools.partial(gnn_block_kernel,
                             n_layers=len(layer_dims), residual=residual)
    vmem = pl.BlockSpec(memory_space=pltpu.MemorySpace.VMEM)
    return pl.pallas_call(
        kern,
        out_shape=jax.ShapeDtypeStruct((N, out_f_final), jnp.float32),
        in_specs=[vmem] * (5 + len(flat)),
        out_specs=vmem,
        cost_estimate=pl.CostEstimate(flops=int(flops), transcendentals=int(trans),
                                      bytes_accessed=int(nbytes)),
    )(v, ea2, S_src, S_diff, A_mean, *flat)


# ---------------------------------------------------------------------------
# Pure-JAX reference (for correctness check)
# ---------------------------------------------------------------------------
def gnn_block_reference(v, edge_attr, src, dst, N, layer_params, residual=True):
    d = v[dst] - v[src]
    norm = jnp.linalg.norm(d, axis=1, keepdims=True)
    unit = d / (norm + 1e-5)
    e = jnp.concatenate([edge_attr[:, :2], norm, unit], axis=1)
    deg = jnp.clip(jax.ops.segment_sum(jnp.ones_like(dst, jnp.float32), dst, N), 1.0)
    x = v
    for (W1, b1, gamma, beta, W_root, bias) in layer_params:
        in_f, out_f = W_root.shape
        h = e @ W1 + b1
        mu = h.mean(axis=0, keepdims=True)
        var = ((h - mu) ** 2).mean(axis=0, keepdims=True)
        h = jnp.tanh((h - mu) / jnp.sqrt(var + 1e-5) * gamma + beta)
        W_e = h.reshape(-1, in_f, out_f)
        msg = jnp.einsum('ei,eio->eo', x[src], W_e)
        agg = jax.ops.segment_sum(msg, dst, N) / deg[:, None]
        out = agg + x @ W_root + bias
        x = jnp.where(out > 0, out, 0.01 * out)
    return x + v if residual else x


# ---------------------------------------------------------------------------
# Main
# ---------------------------------------------------------------------------
if __name__ == "__main__":
    key = jax.random.PRNGKey(0)

    N = 16                       # nodes
    feat_dims = [8, 16, 8]       # GNNBlock feat_dims -> 2 layers
    static_efeats = 2
    D0 = feat_dims[0]
    in_efeat_dim = static_efeats + 1 + D0   # + euclidian + direction(D0)

    # deterministic small directed graph: i -> (i+1)%N, (i+2)%N, (i+5)%N
    src = jnp.repeat(jnp.arange(N), 3)
    dst = (src + jnp.tile(jnp.array([1, 2, 5]), N)) % N
    E = int(src.shape[0])        # 48

    keys = jax.random.split(key, 16)
    v = jax.random.normal(keys[0], (N, D0), jnp.float32)
    edge_attr = jax.random.normal(keys[1], (E, 4), jnp.float32)   # uses first 2 cols

    # one-hot gather / scatter-mean operators (host-built, f32 exact)
    S_src = jax.nn.one_hot(src, N, dtype=jnp.float32)             # (E, N)
    S_dst = jax.nn.one_hot(dst, N, dtype=jnp.float32)             # (E, N)
    S_diff = S_dst - S_src                                        # (E, N), single-matmul d
    deg = jnp.clip(S_dst.sum(axis=0), 1.0)                        # in-degree, (N,)
    A_mean = S_dst.T / deg[:, None]                               # (N, E)

    # deterministic parameter init (synthetic; mirrors module shapes)
    ref_params = []
    kernel_params = []
    kidx = 2
    for in_f, out_f in zip(feat_dims[:-1], feat_dims[1:]):
        F = in_f * out_f
        W1 = 0.2 * jax.random.normal(keys[kidx], (in_efeat_dim, F), jnp.float32)
        b1 = 0.1 * jax.random.normal(keys[kidx + 1], (1, F), jnp.float32)
        gamma = jnp.ones((1, F), jnp.float32)      # BatchNorm1d default init
        beta = jnp.zeros((1, F), jnp.float32)
        W_root = 0.2 * jax.random.normal(keys[kidx + 2], (in_f, out_f), jnp.float32)
        bias = 0.1 * jax.random.normal(keys[kidx + 3], (1, out_f), jnp.float32)
        ref_params.append((W1, b1, gamma, beta, W_root, bias))

        # kernel-side packing: W1 split over the edge-feature concat pieces,
        # plus MXU expansion (R) and group-sum (G) matrices.
        W1s = W1[:static_efeats]                        # (2, F)
        W1n = W1[static_efeats:static_efeats + 1]       # (1, F)
        W1d = W1[static_efeats + 1:]                    # (D0, F)
        R = jnp.repeat(jnp.eye(in_f, dtype=jnp.float32), out_f, axis=1)   # (in, in*out)
        G = jnp.tile(jnp.eye(out_f, dtype=jnp.float32), (in_f, 1))        # (in*out, out)
        kernel_params.append((W1s, W1n, W1d, b1, gamma, beta, W_root, bias, R, G))
        kidx += 4

    out = gnn_block_pallas(v, edge_attr[:, :static_efeats], S_src, S_diff, A_mean,
                           kernel_params, residual=True)
    out = jax.block_until_ready(out)

    ref = gnn_block_reference(v, edge_attr, src, dst, N, ref_params, residual=True)
    assert out.shape == (N, feat_dims[-1])
    err = jnp.max(jnp.abs(out - ref))
    assert jnp.allclose(out, ref, atol=1e-4, rtol=1e-4), f"max err {err}"

    print("KERNEL_OK")
</pallas_src>

<mosaic_0001>
module attributes {stable_mosaic.version = 11 : i64} {
  func.func @gnn_block_kernel(%arg0: memref<16x8xf32, #tpu.memory_space<vmem>>, %arg1: memref<48x2xf32, #tpu.memory_space<vmem>>, %arg2: memref<48x16xf32, #tpu.memory_space<vmem>>, %arg3: memref<48x16xf32, #tpu.memory_space<vmem>>, %arg4: memref<16x48xf32, #tpu.memory_space<vmem>>, %arg5: memref<2x128xf32, #tpu.memory_space<vmem>>, %arg6: memref<1x128xf32, #tpu.memory_space<vmem>>, %arg7: memref<8x128xf32, #tpu.memory_space<vmem>>, %arg8: memref<1x128xf32, #tpu.memory_space<vmem>>, %arg9: memref<1x128xf32, #tpu.memory_space<vmem>>, %arg10: memref<1x128xf32, #tpu.memory_space<vmem>>, %arg11: memref<8x16xf32, #tpu.memory_space<vmem>>, %arg12: memref<1x16xf32, #tpu.memory_space<vmem>>, %arg13: memref<8x128xf32, #tpu.memory_space<vmem>>, %arg14: memref<128x16xf32, #tpu.memory_space<vmem>>, %arg15: memref<2x128xf32, #tpu.memory_space<vmem>>, %arg16: memref<1x128xf32, #tpu.memory_space<vmem>>, %arg17: memref<8x128xf32, #tpu.memory_space<vmem>>, %arg18: memref<1x128xf32, #tpu.memory_space<vmem>>, %arg19: memref<1x128xf32, #tpu.memory_space<vmem>>, %arg20: memref<1x128xf32, #tpu.memory_space<vmem>>, %arg21: memref<16x8xf32, #tpu.memory_space<vmem>>, %arg22: memref<1x8xf32, #tpu.memory_space<vmem>>, %arg23: memref<16x128xf32, #tpu.memory_space<vmem>>, %arg24: memref<128x8xf32, #tpu.memory_space<vmem>>, %arg25: memref<16x8xf32, #tpu.memory_space<vmem>>) attributes {dimension_semantics = [], scalar_prefetch = 0 : i64, scratch_operands = 0 : i64, tpu.core_type = #tpu.core_type<tc>} {
    %c0 = arith.constant 0 : index
    %c0_0 = arith.constant 0 : index
    %0 = vector.load %arg0[%c0, %c0_0] : memref<16x8xf32, #tpu.memory_space<vmem>>, vector<16x8xf32>
    %c0_1 = arith.constant 0 : index
    %c0_2 = arith.constant 0 : index
    %1 = vector.load %arg1[%c0_1, %c0_2] : memref<48x2xf32, #tpu.memory_space<vmem>>, vector<48x2xf32>
    %c0_3 = arith.constant 0 : index
    %c0_4 = arith.constant 0 : index
    %2 = vector.load %arg2[%c0_3, %c0_4] : memref<48x16xf32, #tpu.memory_space<vmem>>, vector<48x16xf32>
    %c0_5 = arith.constant 0 : index
    %c0_6 = arith.constant 0 : index
    %3 = vector.load %arg4[%c0_5, %c0_6] : memref<16x48xf32, #tpu.memory_space<vmem>>, vector<16x48xf32>
    %c0_7 = arith.constant 0 : index
    %c0_8 = arith.constant 0 : index
    %4 = vector.load %arg3[%c0_7, %c0_8] : memref<48x16xf32, #tpu.memory_space<vmem>>, vector<48x16xf32>
    %cst = arith.constant dense<0.000000e+00> : vector<48x8xf32>
    %5 = tpu.matmul %4, %0, %cst {dimension_numbers = #tpu.dot_dimension_numbers<[1], [0], [0], [1], [0, 0, 1, 1], [], []>} : vector<48x16xf32>, vector<16x8xf32>, vector<48x8xf32> -> vector<48x8xf32>
    %6 = arith.mulf %5, %5 : vector<48x8xf32>
    %cst_9 = arith.constant dense<0.000000e+00> : vector<48xf32>
    %7 = vector.multi_reduction <add>, %6, %cst_9 [1] : vector<48x8xf32> to vector<48xf32>
    %8 = vector.shape_cast %7 : vector<48xf32> to vector<48x1xf32>
    %9 = math.sqrt %8 : vector<48x1xf32>
    %cst_10 = arith.constant 9.99999974E-6 : f32
    %10 = vector.broadcast %cst_10 : f32 to vector<48x1xf32>
    %11 = arith.addf %9, %10 : vector<48x1xf32>
    %12 = vector.broadcast %11 : vector<48x1xf32> to vector<48x8xf32>
    %13 = arith.divf %5, %12 : vector<48x8xf32>
    %c0_11 = arith.constant 0 : index
    %c0_12 = arith.constant 0 : index
    %14 = vector.load %arg5[%c0_11, %c0_12] : memref<2x128xf32, #tpu.memory_space<vmem>>, vector<2x128xf32>
    %cst_13 = arith.constant dense<0.000000e+00> : vector<48x128xf32>
    %15 = tpu.matmul %1, %14, %cst_13 {dimension_numbers = #tpu.dot_dimension_numbers<[1], [0], [0], [1], [0, 0, 1, 1], [], []>} : vector<48x2xf32>, vector<2x128xf32>, vector<48x128xf32> -> vector<48x128xf32>
    %c0_14 = arith.constant 0 : index
    %c0_15 = arith.constant 0 : index
    %16 = vector.load %arg6[%c0_14, %c0_15] : memref<1x128xf32, #tpu.memory_space<vmem>>, vector<1x128xf32>
    %17 = vector.broadcast %9 : vector<48x1xf32> to vector<48x128xf32>
    %18 = vector.broadcast %16 : vector<1x128xf32> to vector<48x128xf32>
    %19 = arith.mulf %17, %18 : vector<48x128xf32>
    %20 = arith.addf %15, %19 : vector<48x128xf32>
    %c0_16 = arith.constant 0 : index
    %c0_17 = arith.constant 0 : index
    %21 = vector.load %arg7[%c0_16, %c0_17] : memref<8x128xf32, #tpu.memory_space<vmem>>, vector<8x128xf32>
    %cst_18 = arith.constant dense<0.000000e+00> : vector<48x128xf32>
    %22 = tpu.matmul %13, %21, %cst_18 {dimension_numbers = #tpu.dot_dimension_numbers<[1], [0], [0], [1], [0, 0, 1, 1], [], []>} : vector<48x8xf32>, vector<8x128xf32>, vector<48x128xf32> -> vector<48x128xf32>
    %23 = arith.addf %20, %22 : vector<48x128xf32>
    %c0_19 = arith.constant 0 : index
    %c0_20 = arith.constant 0 : index
    %24 = vector.load %arg8[%c0_19, %c0_20] : memref<1x128xf32, #tpu.memory_space<vmem>>, vector<1x128xf32>
    %25 = vector.broadcast %24 : vector<1x128xf32> to vector<48x128xf32>
    %26 = arith.addf %23, %25 : vector<48x128xf32>
    %cst_21 = arith.constant dense<0.000000e+00> : vector<128xf32>
    %27 = vector.multi_reduction <add>, %26, %cst_21 [0] : vector<48x128xf32> to vector<128xf32>
    %28 = vector.shape_cast %27 : vector<128xf32> to vector<1x128xf32>
    %29 = arith.mulf %26, %26 : vector<48x128xf32>
    %cst_22 = arith.constant dense<0.000000e+00> : vector<128xf32>
    %30 = vector.multi_reduction <add>, %29, %cst_22 [0] : vector<48x128xf32> to vector<128xf32>
    %31 = vector.shape_cast %30 : vector<128xf32> to vector<1x128xf32>
    %cst_23 = arith.constant 0.020833334 : f32
    %32 = vector.broadcast %cst_23 : f32 to vector<1x128xf32>
    %33 = arith.mulf %28, %32 : vector<1x128xf32>
    %cst_24 = arith.constant 0.020833334 : f32
    %34 = vector.broadcast %cst_24 : f32 to vector<1x128xf32>
    %35 = arith.mulf %31, %34 : vector<1x128xf32>
    %36 = arith.mulf %33, %33 : vector<1x128xf32>
    %37 = arith.subf %35, %36 : vector<1x128xf32>
    %38 = vector.broadcast %33 : vector<1x128xf32> to vector<48x128xf32>
    %39 = arith.subf %26, %38 : vector<48x128xf32>
    %cst_25 = arith.constant 9.99999974E-6 : f32
    %40 = vector.broadcast %cst_25 : f32 to vector<1x128xf32>
    %41 = arith.addf %37, %40 : vector<1x128xf32>
    %42 = math.rsqrt %41 : vector<1x128xf32>
    %43 = vector.broadcast %42 : vector<1x128xf32> to vector<48x128xf32>
    %44 = arith.mulf %39, %43 : vector<48x128xf32>
    %c0_26 = arith.constant 0 : index
    %c0_27 = arith.constant 0 : index
    %45 = vector.load %arg9[%c0_26, %c0_27] : memref<1x128xf32, #tpu.memory_space<vmem>>, vector<1x128xf32>
    %46 = vector.broadcast %45 : vector<1x128xf32> to vector<48x128xf32>
    %47 = arith.mulf %44, %46 : vector<48x128xf32>
    %c0_28 = arith.constant 0 : index
    %c0_29 = arith.constant 0 : index
    %48 = vector.load %arg10[%c0_28, %c0_29] : memref<1x128xf32, #tpu.memory_space<vmem>>, vector<1x128xf32>
    %49 = vector.broadcast %48 : vector<1x128xf32> to vector<48x128xf32>
    %50 = arith.addf %47, %49 : vector<48x128xf32>
    %51 = math.tanh %50 : vector<48x128xf32>
    %cst_30 = arith.constant dense<0.000000e+00> : vector<48x8xf32>
    %52 = tpu.matmul %2, %0, %cst_30 {dimension_numbers = #tpu.dot_dimension_numbers<[1], [0], [0], [1], [0, 0, 1, 1], [], []>} : vector<48x16xf32>, vector<16x8xf32>, vector<48x8xf32> -> vector<48x8xf32>
    %c0_31 = arith.constant 0 : index
    %c0_32 = arith.constant 0 : index
    %53 = vector.load %arg13[%c0_31, %c0_32] : memref<8x128xf32, #tpu.memory_space<vmem>>, vector<8x128xf32>
    %cst_33 = arith.constant dense<0.000000e+00> : vector<48x128xf32>
    %54 = tpu.matmul %52, %53, %cst_33 {dimension_numbers = #tpu.dot_dimension_numbers<[1], [0], [0], [1], [0, 0, 1, 1], [], []>} : vector<48x8xf32>, vector<8x128xf32>, vector<48x128xf32> -> vector<48x128xf32>
    %55 = arith.mulf %54, %51 : vector<48x128xf32>
    %c0_34 = arith.constant 0 : index
    %c0_35 = arith.constant 0 : index
    %56 = vector.load %arg14[%c0_34, %c0_35] : memref<128x16xf32, #tpu.memory_space<vmem>>, vector<128x16xf32>
    %cst_36 = arith.constant dense<0.000000e+00> : vector<48x16xf32>
    %57 = tpu.matmul %55, %56, %cst_36 {dimension_numbers = #tpu.dot_dimension_numbers<[1], [0], [0], [1], [0, 0, 1, 1], [], []>} : vector<48x128xf32>, vector<128x16xf32>, vector<48x16xf32> -> vector<48x16xf32>
    %cst_37 = arith.constant dense<0.000000e+00> : vector<16x16xf32>
    %58 = tpu.matmul %3, %57, %cst_37 {dimension_numbers = #tpu.dot_dimension_numbers<[1], [0], [0], [1], [0, 0, 1, 1], [], []>} : vector<16x48xf32>, vector<48x16xf32>, vector<16x16xf32> -> vector<16x16xf32>
    %c0_38 = arith.constant 0 : index
    %c0_39 = arith.constant 0 : index
    %59 = vector.load %arg11[%c0_38, %c0_39] : memref<8x16xf32, #tpu.memory_space<vmem>>, vector<8x16xf32>
    %cst_40 = arith.constant dense<0.000000e+00> : vector<16x16xf32>
    %60 = tpu.matmul %0, %59, %cst_40 {dimension_numbers = #tpu.dot_dimension_numbers<[1], [0], [0], [1], [0, 0, 1, 1], [], []>} : vector<16x8xf32>, vector<8x16xf32>, vector<16x16xf32> -> vector<16x16xf32>
    %61 = arith.addf %58, %60 : vector<16x16xf32>
    %c0_41 = arith.constant 0 : index
    %c0_42 = arith.constant 0 : index
    %62 = vector.load %arg12[%c0_41, %c0_42] : memref<1x16xf32, #tpu.memory_space<vmem>>, vector<1x16xf32>
    %63 = vector.broadcast %62 : vector<1x16xf32> to vector<16x16xf32>
    %64 = arith.addf %61, %63 : vector<16x16xf32>
    %cst_43 = arith.constant 0.000000e+00 : f32
    %65 = vector.broadcast %cst_43 : f32 to vector<16x16xf32>
    %66 = arith.cmpf ogt, %64, %65 : vector<16x16xf32>
    %cst_44 = arith.constant 0.00999999977 : f32
    %67 = vector.broadcast %cst_44 : f32 to vector<16x16xf32>
    %68 = arith.mulf %67, %64 : vector<16x16xf32>
    %69 = arith.select %66, %64, %68 : vector<16x16xi1>, vector<16x16xf32>
    %c0_45 = arith.constant 0 : index
    %c0_46 = arith.constant 0 : index
    %70 = vector.load %arg15[%c0_45, %c0_46] : memref<2x128xf32, #tpu.memory_space<vmem>>, vector<2x128xf32>
    %cst_47 = arith.constant dense<0.000000e+00> : vector<48x128xf32>
    %71 = tpu.matmul %1, %70, %cst_47 {dimension_numbers = #tpu.dot_dimension_numbers<[1], [0], [0], [1], [0, 0, 1, 1], [], []>} : vector<48x2xf32>, vector<2x128xf32>, vector<48x128xf32> -> vector<48x128xf32>
    %c0_48 = arith.constant 0 : index
    %c0_49 = arith.constant 0 : index
    %72 = vector.load %arg16[%c0_48, %c0_49] : memref<1x128xf32, #tpu.memory_space<vmem>>, vector<1x128xf32>
    %73 = vector.broadcast %9 : vector<48x1xf32> to vector<48x128xf32>
    %74 = vector.broadcast %72 : vector<1x128xf32> to vector<48x128xf32>
    %75 = arith.mulf %73, %74 : vector<48x128xf32>
    %76 = arith.addf %71, %75 : vector<48x128xf32>
    %c0_50 = arith.constant 0 : index
    %c0_51 = arith.constant 0 : index
    %77 = vector.load %arg17[%c0_50, %c0_51] : memref<8x128xf32, #tpu.memory_space<vmem>>, vector<8x128xf32>
    %cst_52 = arith.constant dense<0.000000e+00> : vector<48x128xf32>
    %78 = tpu.matmul %13, %77, %cst_52 {dimension_numbers = #tpu.dot_dimension_numbers<[1], [0], [0], [1], [0, 0, 1, 1], [], []>} : vector<48x8xf32>, vector<8x128xf32>, vector<48x128xf32> -> vector<48x128xf32>
    %79 = arith.addf %76, %78 : vector<48x128xf32>
    %c0_53 = arith.constant 0 : index
    %c0_54 = arith.constant 0 : index
    %80 = vector.load %arg18[%c0_53, %c0_54] : memref<1x128xf32, #tpu.memory_space<vmem>>, vector<1x128xf32>
    %81 = vector.broadcast %80 : vector<1x128xf32> to vector<48x128xf32>
    %82 = arith.addf %79, %81 : vector<48x128xf32>
    %cst_55 = arith.constant dense<0.000000e+00> : vector<128xf32>
    %83 = vector.multi_reduction <add>, %82, %cst_55 [0] : vector<48x128xf32> to vector<128xf32>
    %84 = vector.shape_cast %83 : vector<128xf32> to vector<1x128xf32>
    %85 = arith.mulf %82, %82 : vector<48x128xf32>
    %cst_56 = arith.constant dense<0.000000e+00> : vector<128xf32>
    %86 = vector.multi_reduction <add>, %85, %cst_56 [0] : vector<48x128xf32> to vector<128xf32>
    %87 = vector.shape_cast %86 : vector<128xf32> to vector<1x128xf32>
    %cst_57 = arith.constant 0.020833334 : f32
    %88 = vector.broadcast %cst_57 : f32 to vector<1x128xf32>
    %89 = arith.mulf %84, %88 : vector<1x128xf32>
    %cst_58 = arith.constant 0.020833334 : f32
    %90 = vector.broadcast %cst_58 : f32 to vector<1x128xf32>
    %91 = arith.mulf %87, %90 : vector<1x128xf32>
    %92 = arith.mulf %89, %89 : vector<1x128xf32>
    %93 = arith.subf %91, %92 : vector<1x128xf32>
    %94 = vector.broadcast %89 : vector<1x128xf32> to vector<48x128xf32>
    %95 = arith.subf %82, %94 : vector<48x128xf32>
    %cst_59 = arith.constant 9.99999974E-6 : f32
    %96 = vector.broadcast %cst_59 : f32 to vector<1x128xf32>
    %97 = arith.addf %93, %96 : vector<1x128xf32>
    %98 = math.rsqrt %97 : vector<1x128xf32>
    %99 = vector.broadcast %98 : vector<1x128xf32> to vector<48x128xf32>
    %100 = arith.mulf %95, %99 : vector<48x128xf32>
    %c0_60 = arith.constant 0 : index
    %c0_61 = arith.constant 0 : index
    %101 = vector.load %arg19[%c0_60, %c0_61] : memref<1x128xf32, #tpu.memory_space<vmem>>, vector<1x128xf32>
    %102 = vector.broadcast %101 : vector<1x128xf32> to vector<48x128xf32>
    %103 = arith.mulf %100, %102 : vector<48x128xf32>
    %c0_62 = arith.constant 0 : index
    %c0_63 = arith.constant 0 : index
    %104 = vector.load %arg20[%c0_62, %c0_63] : memref<1x128xf32, #tpu.memory_space<vmem>>, vector<1x128xf32>
    %105 = vector.broadcast %104 : vector<1x128xf32> to vector<48x128xf32>
    %106 = arith.addf %103, %105 : vector<48x128xf32>
    %107 = math.tanh %106 : vector<48x128xf32>
    %cst_64 = arith.constant dense<0.000000e+00> : vector<48x16xf32>
    %108 = tpu.matmul %2, %69, %cst_64 {dimension_numbers = #tpu.dot_dimension_numbers<[1], [0], [0], [1], [0, 0, 1, 1], [], []>} : vector<48x16xf32>, vector<16x16xf32>, vector<48x16xf32> -> vector<48x16xf32>
    %c0_65 = arith.constant 0 : index
    %c0_66 = arith.constant 0 : index
    %109 = vector.load %arg23[%c0_65, %c0_66] : memref<16x128xf32, #tpu.memory_space<vmem>>, vector<16x128xf32>
    %cst_67 = arith.constant dense<0.000000e+00> : vector<48x128xf32>
    %110 = tpu.matmul %108, %109, %cst_67 {dimension_numbers = #tpu.dot_dimension_numbers<[1], [0], [0], [1], [0, 0, 1, 1], [], []>} : vector<48x16xf32>, vector<16x128xf32>, vector<48x128xf32> -> vector<48x128xf32>
    %111 = arith.mulf %110, %107 : vector<48x128xf32>
    %c0_68 = arith.constant 0 : index
    %c0_69 = arith.constant 0 : index
    %112 = vector.load %arg24[%c0_68, %c0_69] : memref<128x8xf32, #tpu.memory_space<vmem>>, vector<128x8xf32>
    %cst_70 = arith.constant dense<0.000000e+00> : vector<48x8xf32>
    %113 = tpu.matmul %111, %112, %cst_70 {dimension_numbers = #tpu.dot_dimension_numbers<[1], [0], [0], [1], [0, 0, 1, 1], [], []>} : vector<48x128xf32>, vector<128x8xf32>, vector<48x8xf32> -> vector<48x8xf32>
    %cst_71 = arith.constant dense<0.000000e+00> : vector<16x8xf32>
    %114 = tpu.matmul %3, %113, %cst_71 {dimension_numbers = #tpu.dot_dimension_numbers<[1], [0], [0], [1], [0, 0, 1, 1], [], []>} : vector<16x48xf32>, vector<48x8xf32>, vector<16x8xf32> -> vector<16x8xf32>
    %c0_72 = arith.constant 0 : index
    %c0_73 = arith.constant 0 : index
    %115 = vector.load %arg21[%c0_72, %c0_73] : memref<16x8xf32, #tpu.memory_space<vmem>>, vector<16x8xf32>
    %cst_74 = arith.constant dense<0.000000e+00> : vector<16x8xf32>
    %116 = tpu.matmul %69, %115, %cst_74 {dimension_numbers = #tpu.dot_dimension_numbers<[1], [0], [0], [1], [0, 0, 1, 1], [], []>} : vector<16x16xf32>, vector<16x8xf32>, vector<16x8xf32> -> vector<16x8xf32>
    %117 = arith.addf %114, %116 : vector<16x8xf32>
    %c0_75 = arith.constant 0 : index
    %c0_76 = arith.constant 0 : index
    %118 = vector.load %arg22[%c0_75, %c0_76] : memref<1x8xf32, #tpu.memory_space<vmem>>, vector<1x8xf32>
    %119 = vector.broadcast %118 : vector<1x8xf32> to vector<16x8xf32>
    %120 = arith.addf %117, %119 : vector<16x8xf32>
    %cst_77 = arith.constant 0.000000e+00 : f32
    %121 = vector.broadcast %cst_77 : f32 to vector<16x8xf32>
    %122 = arith.cmpf ogt, %120, %121 : vector<16x8xf32>
    %cst_78 = arith.constant 0.00999999977 : f32
    %123 = vector.broadcast %cst_78 : f32 to vector<16x8xf32>
    %124 = arith.mulf %123, %120 : vector<16x8xf32>
    %125 = arith.select %122, %120, %124 : vector<16x8xi1>, vector<16x8xf32>
    %126 = arith.addf %125, %0 : vector<16x8xf32>
    %c0_79 = arith.constant 0 : index
    %c0_80 = arith.constant 0 : index
    %127 = vector.load %arg25[%c0_79, %c0_80] : memref<16x8xf32, #tpu.memory_space<vmem>>, vector<16x8xf32>
    tpu.vector_store %arg25[%c0_79, %c0_80], %126 {strides = array<i32>} : memref<16x8xf32, #tpu.memory_space<vmem>>, vector<16x8xf32>,
    return
  }
}

</mosaic_0001>

<bundles_post_ra>
// kernel: tpu_custom_call.1
= control target key start
LH: loop header
LB: loop body
LE: loop exit
PB: predicated region body
PF: predicated region fallthrough
CT: control target
= control target key end

     0   :  { %vm102_vm0 = vcmask 130048   ;;  %vm334_vm1 = vcmask 1041408   ;;  %vm315_vm2 = vcmask 15360   ;;  %vm222_vm3 = vcmask 64512   ;;  %s3303_s0 = inlined_call_operand.vmem [shape: f32[16,8], index: 0, kind: input, shape index: {}]   ;;  %s3304_s3 = inlined_call_operand.vmem [shape: f32[48,16], index: 3, kind: input, shape index: {}]   ;;  %s3305_s5 = inlined_call_operand.vmem [shape: f32[2,128], index: 5, kind: input, shape index: {}]   ;;  %s3306_s1 = inlined_call_operand.vmem [shape: f32[48,2], index: 1, kind: input, shape index: {}]   ;;  %s3307_s2 = inlined_call_operand.vmem [shape: f32[48,16], index: 2, kind: input, shape index: {}]   ;;  %s3308_s7 = inlined_call_operand.vmem [shape: f32[8,128], index: 7, kind: input, shape index: {}]   ;;  %s3309_s13 = inlined_call_operand.vmem [shape: f32[8,128], index: 13, kind: input, shape index: {}]   ;;  %s3310_s6 = inlined_call_operand.vmem [shape: f32[1,128], index: 6, kind: input, shape index: {}]   ;;  %s3311_s14 = inlined_call_operand.vmem [shape: f32[128,16], index: 14, kind: input, shape index: {}]   ;;  %s3312_s8 = inlined_call_operand.vmem [shape: f32[1,128], index: 8, kind: input, shape index: {}]   ;;  %s3313_s9 = inlined_call_operand.vmem [shape: f32[1,128], index: 9, kind: input, shape index: {}]   ;;  %s3314_s10 = inlined_call_operand.vmem [shape: f32[1,128], index: 10, kind: input, shape index: {}]   ;;  %s3315_s11 = inlined_call_operand.vmem [shape: f32[8,16], index: 11, kind: input, shape index: {}]   ;;  %s3316_s4 = inlined_call_operand.vmem [shape: f32[16,48], index: 4, kind: input, shape index: {}]   ;;  %s3317_s15 = inlined_call_operand.vmem [shape: f32[2,128], index: 15, kind: input, shape index: {}]   ;;  %s3318_s17 = inlined_call_operand.vmem [shape: f32[8,128], index: 17, kind: input, shape index: {}]   ;;  %s3319_s12 = inlined_call_operand.vmem [shape: f32[1,16], index: 12, kind: input, shape index: {}]   ;;  %s3320_s23 = inlined_call_operand.vmem [shape: f32[16,128], index: 23, kind: input, shape index: {}]   ;;  %s3321_s16 = inlined_call_operand.vmem [shape: f32[1,128], index: 16, kind: input, shape index: {}]   ;;  %s3322_s18 = inlined_call_operand.vmem [shape: f32[1,128], index: 18, kind: input, shape index: {}]   ;;  %s3323_s24 = inlined_call_operand.vmem [shape: f32[128,8], index: 24, kind: input, shape index: {}]   ;;  %s3324_s21 = inlined_call_operand.vmem [shape: f32[16,8], index: 21, kind: input, shape index: {}]   ;;  %s3325_s19 = inlined_call_operand.vmem [shape: f32[1,128], index: 19, kind: input, shape index: {}]   ;;  %s3326_s20 = inlined_call_operand.vmem [shape: f32[1,128], index: 20, kind: input, shape index: {}]   ;;  %s3327_s22 = inlined_call_operand.vmem [shape: f32[1,8], index: 22, kind: input, shape index: {}]   ;;  %s3328_s25 = inlined_call_operand.vmem [shape: f32[16,8], index: 25, kind: output, shape index: {}]  }
   0x1   :  { %3334 = sst [smem:[#allocation2_spill]] %s3303_s0 }
   0x2   :  { %3335 = sst [smem:[#allocation3_spill]] %s3304_s3 }
   0x3   :  { %3336 = sst [smem:[#allocation4_spill]] %s3305_s5 }
   0x4   :  { %3337 = sst [smem:[#allocation5_spill]] %s3306_s1  ;;  %s3346_s3 = sld [smem:[#allocation4_spill]] }
   0x5   :  { %3338 = sst [smem:[#allocation6_spill]] %s3307_s2  ;;  %s3345_s2 = sld [smem:[#allocation3_spill]] }
   0x6   :  { %3339 = sst [smem:[#allocation7_spill]] %s3308_s7  ;;  %s3348_s0 = sld [smem:[#allocation6_spill]] }
   0x7   :  { %3340 = sst [smem:[#allocation8_spill]] %s3309_s13  ;;  %s3344_s13 = sld [smem:[#allocation2_spill]] }
   0x8   :  { %3341 = sst [smem:[#allocation9_spill]] %s3310_s6  ;;  %s3349_s27 = sld [smem:[#allocation7_spill]] }
   0x9   :  { %3342 = sst [smem:[#allocation10_spill]] %s3311_s14 }
   0xa   :  { %3343 = sst [smem:[#allocation11_spill]] %s3312_s8  ;;  %v301_v4 = vld [vmem:[%s3346_s3] sm:$0x3]  ;;  %s3347_s3 = sld [smem:[#allocation5_spill]] }
   0xb   :  { %v96_v2 = vld [vmem:[%s3345_s2] sm:$0xff]  ;;  %2527 = vmatprep.subr.msk.mxu1 %vm334_vm1, %v301_v4  ;;  %v97_v5 = vld [vmem:[%s3345_s2 + $0x8] sm:$0xff]  ;;  %v98_v6 = vld [vmem:[%s3345_s2 + $0x10] sm:$0xff]  ;;  %s3352_s30 = sld [smem:[#allocation10_spill]]  ;;  %s3353_s8 = sld [smem:[#allocation11_spill]] }
   0xc   :  { %2192 = vmatprep.mubr.msk.f32.mxu0 %vm102_vm0, %v96_v2  ;;  %2528 = vmatpush3.msk.msra.mxu1 %vm334_vm1, %v301_v4  ;;  %v99_v7 = vld [vmem:[%s3345_s2 + $0x18] sm:$0xff]  ;;  %v100_v8 = vld [vmem:[%s3345_s2 + $0x20] sm:$0xff]  ;;  %v101_v9 = vld [vmem:[%s3345_s2 + $0x28] sm:$0xff]  ;;  %s3350_s2 = sld [smem:[#allocation8_spill]] }
   0xd   :  { %v2744_v0 = vld [vmem:[%s3344_s13] sm:$0xff]  ;;  %v2749_v1 = vld [vmem:[%s3344_s13 + $0x8] sm:$0xff]  ;;  %v2811_v14 = vld [vmem:[%s3348_s0 + $0x10] sm:$0xff] }
   0xe   :  { %v2419_v3 = vpack.c.bf16 %v2749_v1, %v2744_v0  ;;  %v2801_v12 = vld [vmem:[%s3348_s0] sm:$0xff]  ;;  %v2806_v13 = vld [vmem:[%s3348_s0 + $0x8] sm:$0xff]  ;;  %v2822_v15 = vld [vmem:[%s3348_s0 + $0x18] sm:$0xff] }
   0xf   :  { %v2827_v16 = vld [vmem:[%s3348_s0 + $0x20] sm:$0xff]  ;;  %v2836_v17 = vld [vmem:[%s3348_s0 + $0x28] sm:$0xff]  ;;  %s3351_s0 = sld [smem:[#allocation9_spill]] }
  0x10   :  { %2420 = vmatprep.subr.bf16.mxu0 %v2419_v3  ;;  %v2786_v10 = vld [vmem:[%s3347_s3] sm:$0xff]  ;;  %v2794_v11 = vld [vmem:[%s3347_s3 + $0x8] sm:$0xff]  ;;  %v2875_v38 = vld [vmem:[%s3347_s3 + $0x10] sm:$0xff] }
  0x11   :  { %2422 = vmatpush3.bf16.msra.mxu0 %v2419_v3  ;;  %2206 = vmatprep.mubr.msk.f32.mxu1 %vm315_vm2, %v2875_v38  ;;  %v2882_v39 = vld [vmem:[%s3347_s3 + $0x18] sm:$0xff]  ;;  %v2889_v40 = vld [vmem:[%s3347_s3 + $0x20] sm:$0xff]  ;;  %v2896_v41 = vld [vmem:[%s3347_s3 + $0x28] sm:$0xff] }
  0x12   :  { %2201 = vmatprep.subr.msk.mxu0 %vm334_vm1, %v301_v4  ;;  %2207 = vmatmul.mubr.msk.f32.vlgmr.msra.gmra.mrb[0].mxu1 %vm315_vm2, %v2882_v39  ;;  %v433_v42 = vld [vmem:[%s3349_s27] sm:$0xff] }
  0x13   :  { %2209 = vmatprep.mubr.msk.f32.mxu1 %vm315_vm2, %v2889_v40  ;;  %2212 = vmatprep.subr.mxu1 %v433_v42  ;;  %v2906_v43 = vld [vmem:[%s3350_s2] sm:$0xff] }
  0x14   :  { %2193 = vmatmul.mubr.msk.f32.vlgmr.msra.gmra.mrb[0].mxu0 %vm102_vm0, %v97_v5  ;;  %2213 = vmatpush3.msra.mxu1 %v433_v42 }
  0x15   :  { %2195 = vmatprep.mubr.msk.f32.mxu0 %vm102_vm0, %v98_v6  ;;  %2202 = vmatpush3.msk.msra.mxu0 %vm334_vm1, %v301_v4  ;;  %v2924_v58 = vld [vmem:[%s3351_s0] ss:$0 sm:$0xff] }
  0x16   :  { %2424 = vmatprep.subr.bf16.mxu0 %v2419_v3  ;;  %2210 = vmatmul.mubr.msk.f32.gmra.mrb[2].mxu1 %vm315_vm2, %v2896_v41 }
  0x17   :  { %2236 = vmatprep.subr.mxu1 %v2906_v43 }
  0x18   :  { %2196 = vmatmul.mubr.msk.f32.gmra.mrb[2].mxu0 %vm102_vm0, %v99_v7 }
  0x19   :  { %2198 = vmatprep.mubr.msk.f32.mxu0 %vm102_vm0, %v100_v8 }
  0x1c   :  { %2199 = vmatmul.mubr.msk.f32.gmra.mrb[4].mxu0 %vm102_vm0, %v101_v9 }
  0x1d   :  { %2203 = vmatprep.mubr.msk.f32.mxu0 %vm315_vm2, %v2786_v10 }
  0x20   :  { %2204 = vmatmul.mubr.msk.f32.vlgmr.msra.gmra.mrb[6].mxu0 %vm315_vm2, %v2794_v11 }
  0x21   :  { %2426 = vmatpush3.bf16.msra.mxu0 %v2419_v3  ;;  %2227 = vmatprep.mubr.msk.f32.mxu0 %vm102_vm0, %v2801_v12 }
  0x24   :  { %2228 = vmatmul.mubr.msk.f32.vlgmr.msra.gmra.mrb[8].mxu0 %vm102_vm0, %v2806_v13 }
  0x25   :  { %2230 = vmatprep.mubr.msk.f32.mxu0 %vm102_vm0, %v2811_v14 }
  0x28   :  { %2231 = vmatmul.mubr.msk.f32.gmra.mrb[10].mxu0 %vm102_vm0, %v2822_v15 }
  0x29   :  { %2233 = vmatprep.mubr.msk.f32.mxu0 %vm102_vm0, %v2827_v16 }
  0x2c   :  { %2234 = vmatmul.mubr.msk.f32.gmra.mrb[12].mxu0 %vm102_vm0, %v2836_v17 }
  0xe7   :  { %v2840_v18 = vpop.f32.mrb[0].mxu0 }
  0xe8   :  { %v2842_v19 = vpop.f32.mrb[1].mxu0  ;;  %v217_v21 = vmul.f32 %v2840_v18, %v2840_v18 }
  0xe9   :  { %v216_v20 = vmul.f32 %v2842_v19, %v2842_v19 }
  0xea   :  { %v226_v28 = vsel %vm222_vm3, %v217_v21, 0.0 }
  0xeb   :  { %v2848_v22 = vpop.f32.mrb[2].mxu0  ;;  %v223_v23 = vsel %vm222_vm3, %v216_v20, 0.0 }
  0xec   :  { %224 = vadd.xlane.f32.xlu0 %v223_v23  ;;  %v2851_v24 = vpop.f32.mrb[3].mxu0  ;;  %v219_v26 = vmul.f32 %v2848_v22, %v2848_v22 }
  0xed   :  { %v218_v25 = vmul.f32 %v2851_v24, %v2851_v24 }
  0xee   :  { %v232_v33 = vsel %vm222_vm3, %v219_v26, 0.0 }
  0xef   :  { %v2857_v27 = vpop.f32.mrb[4].mxu0  ;;  %v229_v29 = vsel %vm222_vm3, %v218_v25, 0.0 }
  0xf0   :  { %227 = vadd.xlane.f32.xlu0 %v226_v28  ;;  %230 = vadd.xlane.f32.xlu1 %v229_v29  ;;  %v2861_v30 = vpop.f32.mrb[5].mxu0  ;;  %v221_v32 = vmul.f32 %v2857_v27, %v2857_v27 }
  0xf1   :  { %v220_v31 = vmul.f32 %v2861_v30, %v2861_v30 }
  0xf2   :  { %v238_v35 = vsel %vm222_vm3, %v221_v32, 0.0 }
  0xf3   :  { %v235_v34 = vsel %vm222_vm3, %v220_v31, 0.0  ;;  %v2870_v36 = vpop.f32.mrb[6].mxu0 }
  0xf4   :  { %233 = vadd.xlane.f32.xlu1 %v232_v33  ;;  %236 = vadd.xlane.f32.xlu0 %v235_v34  ;;  %v404_v37 = vpop.f32.mrb[7].mxu0 }
  0xf7   :  { %v2909_v44 = vpop.f32.mrb[8].mxu0 }
  0xf8   :  { %239 = vadd.xlane.f32.xlu1 %v238_v35  ;;  %v2911_v45 = vpop.f32.mrb[9].mxu0 }
  0xfb   :  { %v2913_v46 = vpop.f32.mrb[10].mxu0 }
  0xfc   :  { %v2915_v47 = vpop.f32.mrb[11].mxu0 }
  0xff   :  { %v2917_v48 = vpop.f32.mrb[12].mxu0 }
 0x100   :  { %v2919_v49 = vpop.f32.mrb[13].mxu0 }
 0x179   :  { %v225_v50 = vpop.xlane.xlu0 %224 }
 0x17a   :  { %2557 = vrsqrt.f32 %v225_v50  ;;  %vm243_vm4 = vcmp.eq.f32.partialorder %v225_v50, inf  ;;  %v246_v59 = vand.u32 2147483648, %v225_v50  ;;  %vm245_vm5 = vcmp.eq.f32.partialorder %v225_v50, 0.0 }
 0x17d   :  { %v228_v51 = vpop.xlane.xlu0 %227  ;;  %v231_v52 = vpop.xlane.xlu1 %230 }
 0x17e   :  { %2559 = vrsqrt.f32 %v228_v51  ;;  %vm257_vm6 = vcmp.eq.f32.partialorder %v231_v52, inf  ;;  %vm259_vm7 = vcmp.eq.f32.partialorder %v231_v52, 0.0  ;;  %v260_v6 = vand.u32 2147483648, %v231_v52 }
 0x17f   :  { %2561 = vrsqrt.f32 %v231_v52  ;;  %vm250_vm8 = vcmp.eq.f32.partialorder %v228_v51, inf  ;;  %v253_v7 = vand.u32 2147483648, %v228_v51  ;;  %vm252_vm9 = vcmp.eq.f32.partialorder %v228_v51, 0.0 }
 0x181   :  { %v234_v53 = vpop.xlane.xlu1 %233  ;;  %v237_v54 = vpop.xlane.xlu0 %236 }
 0x182   :  { %2563 = vrsqrt.f32 %v234_v53  ;;  %vm264_vm10 = vcmp.eq.f32.partialorder %v234_v53, inf  ;;  %vm266_vm11 = vcmp.eq.f32.partialorder %v234_v53, 0.0  ;;  %v267_v33 = vand.u32 2147483648, %v234_v53 }
 0x183   :  { %2565 = vrsqrt.f32 %v237_v54  ;;  %vm271_vm12 = vcmp.eq.f32.partialorder %v237_v54, inf  ;;  %vm273_vm13 = vcmp.eq.f32.partialorder %v237_v54, 0.0 }
 0x184   :  { %v2558_v55 = vpop.eup %2557 }
 0x185   :  { %v240_v56 = vpop.xlane.xlu1 %239  ;;  %v242_v57 = vmul.f32 %v2558_v55, %v225_v50 }
 0x186   :  { %2567 = vrsqrt.f32 %v240_v56  ;;  %vm278_vm14 = vcmp.eq.f32.partialorder %v240_v56, inf  ;;  %vm280_vm15 = vcmp.eq.f32.partialorder %v240_v56, 0.0 }
 0x187   :  { %v244_v60 = vsel %vm243_vm4, %v225_v50, %v242_v57  ;;  %vm1070_vm4 = vcmask 392192  }
 0x188   :  { %v2560_v61 = vpop.eup %2559  ;;  %v2926_v62 = vsel %vm245_vm5, %v246_v59, %v244_v60 }
 0x189   :  { %v2562_v63 = vpop.eup %2561  ;;  %v249_v2 = vmul.f32 %v2560_v61, %v228_v51  ;;  %v283_v3 = vadd.f32 1e-05, %v2926_v62  ;;  %v309_v4 = vmul.f32 %v2924_v58, %v2926_v62  ;;  %v281_v61 = vand.u32 2147483648, %v240_v56 }
 0x18a   :  { %v256_v5 = vmul.f32 %v2562_v63, %v231_v52 }
 0x18b   :  { %v251_v8 = vsel %vm250_vm8, %v228_v51, %v249_v2  ;;  %2569 = vrcp.f32 %v283_v3  ;;  %v2931_v9 = vadd.f32 %v404_v37, %v309_v4  ;;  %v274_v37 = vand.u32 2147483648, %v237_v54 }
 0x18c   :  { %v2564_v20 = vpop.eup %2563  ;;  %v258_v21 = vsel %vm257_vm6, %v231_v52, %v256_v5  ;;  %v2934_v23 = vsel %vm252_vm9, %v253_v7, %v251_v8 }
 0x18d   :  { %v2566_v25 = vpop.eup %2565  ;;  %v2937_v26 = vsel %vm259_vm7, %v260_v6, %v258_v21  ;;  %v263_v28 = vmul.f32 %v2564_v20, %v234_v53  ;;  %v284_v29 = vadd.f32 1e-05, %v2934_v23  ;;  %v310_v31 = vmul.f32 %v2924_v58, %v2934_v23  ;;  %v884_v20 = vld [vmem:[%s3352_s30 + $0x38] sm:$0xff] }
 0x18e   :  { %v285_v32 = vadd.f32 1e-05, %v2937_v26  ;;  %v270_v34 = vmul.f32 %v2566_v25, %v237_v54  ;;  %v885_v25 = vld [vmem:[%s3352_s30 + $0x40] sm:$0xff] }
 0x18f   :  { %v265_v35 = vsel %vm264_vm10, %v234_v53, %v263_v28  ;;  %2571 = vrcp.f32 %v284_v29  ;;  %v2944_v42 = vadd.f32 %v2870_v36, %v310_v31  ;;  %v886_v28 = vld [vmem:[%s3352_s30 + $0x48] sm:$0xff]  ;;  %v887_v29 = vld [vmem:[%s3352_s30 + $0x50] sm:$0xff] }
 0x190   :  { %v2568_v50 = vpop.eup %2567  ;;  %2573 = vrcp.f32 %v285_v32  ;;  %v2947_v51 = vsel %vm266_vm11, %v267_v33, %v265_v35  ;;  %v272_v52 = vsel %vm271_vm12, %v237_v54, %v270_v34  ;;  %v2443_v31 = vpack.c.bf16 %v886_v28, %v885_v25  ;;  %v888_v32 = vld [vmem:[%s3352_s30 + $0x58] sm:$0xff]  ;;  %v889_v34 = vld [vmem:[%s3352_s30 + $0x60] sm:$0xff]  ;;  %v890_v35 = vld [vmem:[%s3352_s30 + $0x68] sm:$0xff] }
 0x191   :  { %v286_v55 = vadd.f32 1e-05, %v2947_v51  ;;  %v2950_v57 = vsel %vm273_vm13, %v274_v37, %v272_v52  ;;  %v277_v59 = vmul.f32 %v2568_v50, %v240_v56  ;;  %v2447_v33 = vpack.c.bf16 %v888_v32, %v887_v29  ;;  %v891_v50 = vld [vmem:[%s3352_s30 + $0x70] sm:$0xff]  ;;  %v892_v52 = vld [vmem:[%s3352_s30 + $0x78] sm:$0xff] }
 0x192   :  { %v287_v60 = vadd.f32 1e-05, %v2950_v57  ;;  %v2451_v37 = vpack.c.bf16 %v890_v35, %v889_v34 }
 0x193   :  { %2575 = vrcp.f32 %v286_v55  ;;  %v279_v63 = vsel %vm278_vm14, %v240_v56, %v277_v59  ;;  %v2455_v55 = vpack.c.bf16 %v892_v52, %v891_v50 }
 0x194   :  { %2577 = vrcp.f32 %v287_v60  ;;  %v2953_v36 = vsel %vm280_vm15, %v281_v61, %v279_v63  ;;  %v2000_v60 = vld [vmem:[%s3353_s8] ss:$0 sm:$0xff] }
 0x195   :  { %v2570_v53 = vpop.eup %2569  ;;  %v288_v2 = vadd.f32 1e-05, %v2953_v36 }
 0x196   :  { %v2957_v54 = vmul.f32 %v2570_v53, %v2842_v19 }
 0x197   :  { %2579 = vrcp.f32 %v288_v2 }
 0x198   :  { %2214 = vmatprep.mubr.msk.f32.mxu1 %vm222_vm3, %v2957_v54 }
 0x199   :  { %v2572_v3 = vpop.eup %2571 }
 0x19a   :  { %v2574_v4 = vpop.eup %2573  ;;  %v2962_v5 = vmul.f32 %v2572_v3, %v2840_v18  ;;  %v312_v3 = vmul.f32 %v2924_v58, %v2947_v51 }
 0x19b   :  { %v2965_v56 = vmul.f32 %v2574_v4, %v2851_v24 }
 0x19c   :  { %2215 = vmatmul.mubr.msk.f32.vlgmr.msra.gmra.mrb[4].mxu1 %vm222_vm3, %v2962_v5 }
 0x19d   :  { %v2576_v6 = vpop.eup %2575  ;;  %2217 = vmatprep.mubr.msk.f32.mxu1 %vm222_vm3, %v2965_v56  ;;  %2237 = vmatpush3.msra.mxu1 %v2906_v43  ;;  %v879_v43 = vld [vmem:[%s3352_s30 + $0x10] sm:$0xff] }
 0x19e   :  { %v2578_v19 = vpop.eup %2577  ;;  %v2973_v7 = vmul.f32 %v2576_v6, %v2848_v22  ;;  %v877_v22 = vld [vmem:[%s3352_s30] sm:$0xff] }
 0x19f   :  { %v2976_v8 = vmul.f32 %v2578_v19, %v2861_v30  ;;  %v311_v19 = vmul.f32 %v2924_v58, %v2937_v26 }
 0x1a0   :  { %2218 = vmatmul.mubr.msk.f32.gmra.mrb[0].mxu1 %vm222_vm3, %v2973_v7 }
 0x1a1   :  { %v2580_v18 = vpop.eup %2579  ;;  %2220 = vmatprep.mubr.msk.f32.mxu1 %vm222_vm3, %v2976_v8 }
 0x1a2   :  { %v2983_v24 = vmul.f32 %v2580_v18, %v2857_v27  ;;  %v878_v27 = vld [vmem:[%s3352_s30 + $0x8] sm:$0xff] }
 0x1a3   :  { %v2427_v30 = vpack.c.bf16 %v878_v27, %v877_v22 }
 0x1a4   :  { %2221 = vmatmul.mubr.msk.f32.gmra.mrb[2].mxu1 %vm222_vm3, %v2983_v24 }
 0x1a5   :  { %2238 = vmatprep.mubr.msk.f32.mxu1 %vm222_vm3, %v2911_v45  ;;  %2428 = vmatprep.subr.bf16.mxu0 %v2427_v30 }
 0x1a6   :  { %2430 = vmatpush3.bf16.msra.mxu0 %v2427_v30 }
 0x1a8   :  { %2239 = vmatmul.mubr.msk.f32.vlgmr.msra.gmra.mrb[6].mxu1 %vm222_vm3, %v2909_v44  ;;  %v880_v44 = vld [vmem:[%s3352_s30 + $0x18] sm:$0xff] }
 0x1a9   :  { %2241 = vmatprep.mubr.msk.f32.mxu1 %vm222_vm3, %v2915_v47  ;;  %v2431_v45 = vpack.c.bf16 %v880_v44, %v879_v43  ;;  %v882_v47 = vld [vmem:[%s3352_s30 + $0x28] sm:$0xff]  ;;  %v314_v44 = vmul.f32 %v2924_v58, %v2953_v36 }
 0x1ab   :  { %2432 = vmatprep.subr.bf16.mxu0 %v2431_v45 }
 0x1ac   :  { %2242 = vmatmul.mubr.msk.f32.gmra.mrb[8].mxu1 %vm222_vm3, %v2913_v46  ;;  %2434 = vmatpush3.bf16.msra.mxu0 %v2431_v45  ;;  %v881_v46 = vld [vmem:[%s3352_s30 + $0x20] sm:$0xff] }
 0x1ad   :  { %2244 = vmatprep.mubr.msk.f32.mxu1 %vm222_vm3, %v2919_v49  ;;  %v883_v49 = vld [vmem:[%s3352_s30 + $0x30] sm:$0xff] }
 0x1ae   :  { %v2439_v21 = vpack.c.bf16 %v884_v20, %v883_v49 }
 0x1b0   :  { %2245 = vmatmul.mubr.msk.f32.gmra.mrb[10].mxu1 %vm222_vm3, %v2917_v48  ;;  %v2435_v48 = vpack.c.bf16 %v882_v47, %v881_v46 }
 0x1b2   :  { %2436 = vmatprep.subr.bf16.mxu0 %v2435_v48 }
 0x1b3   :  { %2438 = vmatpush3.bf16.msra.mxu0 %v2435_v48  ;;  %v313_v48 = vmul.f32 %v2924_v58, %v2950_v57 }
 0x1b4   :  { %2440 = vmatprep.subr.bf16.mxu0 %v2439_v21 }
 0x1b7   :  { %2442 = vmatpush3.bf16.msra.mxu0 %v2439_v21 }
 0x1b8   :  { %2444 = vmatprep.subr.bf16.mxu0 %v2443_v31 }
 0x1bb   :  { %2446 = vmatpush3.bf16.msra.mxu0 %v2443_v31 }
 0x1bc   :  { %2448 = vmatprep.subr.bf16.mxu0 %v2447_v33 }
 0x1bf   :  { %2450 = vmatpush3.bf16.msra.mxu0 %v2447_v33 }
 0x1c0   :  { %2452 = vmatprep.subr.bf16.mxu0 %v2451_v37 }
 0x1c3   :  { %2454 = vmatpush3.bf16.msra.mxu0 %v2451_v37 }
 0x1c4   :  { %2456 = vmatprep.subr.bf16.mxu0 %v2455_v55 }
 0x1c7   :  { %2458 = vmatpush3.bf16.msra.mxu0 %v2455_v55 }
 0x26f   :  { %v2216_v59 = vpop.f32.mrb[4].mxu1 }
 0x270   :  { %v548_v61 = vadd.f32 %v2216_v59, %v2944_v42  ;;  %v518_v63 = vpop.f32.mrb[5].mxu1 }
 0x271   :  { %v547_v53 = vadd.f32 %v518_v63, %v2931_v9 }
 0x272   :  { %v3052_v2 = vadd.f32 %v2000_v60, %v548_v61 }
 0x273   :  { %v3056_v4 = vadd.f32 %v2000_v60, %v547_v53  ;;  %v2219_v6 = vpop.f32.mrb[0].mxu1 }
 0x274   :  { %v578_v18 = vmul.f32 %v3052_v2, %v3052_v2  ;;  %v2533_v22 = vadd.f32 %v2219_v6, %v312_v3  ;;  %v528_v27 = vpop.f32.mrb[1].mxu1 }
 0x275   :  { %v566_v42 = vadd.f32 %v3052_v2, %v3056_v4  ;;  %v577_v9 = vmul.f32 %v3056_v4, %v3056_v4  ;;  %v2534_v30 = vadd.f32 %v528_v27, %v311_v19 }
 0x276   :  { %v563_v43 = vadd.f32 %v2533_v22, %v2000_v60 }
 0x277   :  { %v583_v45 = vadd.f32 %v578_v18, %v577_v9  ;;  %v562_v46 = vadd.f32 %v2534_v30, %v2000_v60  ;;  %v2222_v47 = vpop.f32.mrb[2].mxu1 }
 0x278   :  { %v2535_v49 = vadd.f32 %v2222_v47, %v314_v44  ;;  %v538_v20 = vpop.f32.mrb[3].mxu1  ;;  %v580_v29 = vmul.f32 %v563_v43, %v563_v43 }
 0x279   :  { %v567_v21 = vadd.f32 %v566_v42, %v562_v46  ;;  %v579_v25 = vmul.f32 %v562_v46, %v562_v46  ;;  %v2536_v28 = vadd.f32 %v538_v20, %v313_v48 }
 0x27a   :  { %v565_v32 = vadd.f32 %v2535_v49, %v2000_v60 }
 0x27b   :  { %v584_v31 = vadd.f32 %v583_v45, %v579_v25  ;;  %v564_v33 = vadd.f32 %v2536_v28, %v2000_v60  ;;  %v568_v34 = vadd.f32 %v567_v21, %v563_v43  ;;  %v3070_v35 = vpop.f32.mrb[6].mxu1 }
 0x27c   :  { %v3072_v37 = vpop.f32.mrb[7].mxu1  ;;  %v582_v59 = vmul.f32 %v565_v32, %v565_v32 }
 0x27d   :  { %v569_v50 = vadd.f32 %v568_v34, %v564_v33  ;;  %v581_v52 = vmul.f32 %v564_v33, %v564_v33  ;;  %v585_v55 = vadd.f32 %v584_v31, %v580_v29 }
 0x27f   :  { %v570_v61 = vadd.f32 %v569_v50, %v565_v32  ;;  %v586_v58 = vadd.f32 %v585_v55, %v581_v52  ;;  %v3074_v63 = vpop.f32.mrb[8].mxu1 }
 0x280   :  { %v3076_v53 = vpop.f32.mrb[9].mxu1 }
 0x281   :  { %v571_v3 = vrot.slane %v570_v61, 4  ;;  %v587_v6 = vadd.f32 %v586_v58, %v582_v59  ;;  %v2001_v58 = vld [vmem:[%s3313_s9] ss:$0 sm:$0xff] }
 0x283   :  { %v572_v19 = vadd.f32 %v571_v3, %v570_v61  ;;  %v588_v18 = vrot.slane %v587_v6, 4  ;;  %v3078_v60 = vpop.f32.mrb[10].mxu1 }
 0x284   :  { %v3080_v22 = vpop.f32.mrb[11].mxu1 }
 0x285   :  { %v573_v27 = vrot.slane %v572_v19, 2  ;;  %v589_v42 = vadd.f32 %v588_v18, %v587_v6 }
 0x287   :  { %v574_v9 = vadd.f32 %v573_v27, %v572_v19  ;;  %v590_v30 = vrot.slane %v589_v42, 2 }
 0x289   :  { %v575_v44 = vrot.slane %v574_v9, 1  ;;  %v591_v45 = vadd.f32 %v590_v30, %v589_v42 }
 0x28b   :  { %v576_v47 = vadd.f32 %v575_v44, %v574_v9  ;;  %v592_v48 = vrot.slane %v591_v45, 1 }
 0x28d   :  { %v593_v49 = vadd.f32 %v592_v48, %v591_v45  ;;  %v594_v20 = vmul.f32 0.020833334, %v576_v47 }
 0x28f   :  { %v595_v21 = vmul.f32 0.020833334, %v593_v49  ;;  %v596_v25 = vmul.f32 %v594_v20, %v594_v20  ;;  %v602_v28 = vsub.f32 %v564_v33, %v594_v20  ;;  %v599_v29 = vsub.f32 %v3052_v2, %v594_v20  ;;  %v2002_v2 = vld [vmem:[%s3314_s10] ss:$0 sm:$0xff] }
 0x290   :  { %v598_v31 = vsub.f32 %v3056_v4, %v594_v20  ;;  %v601_v34 = vsub.f32 %v563_v43, %v594_v20  ;;  %v600_v50 = vsub.f32 %v562_v46, %v594_v20  ;;  %v603_v52 = vsub.f32 %v565_v32, %v594_v20 }
 0x291   :  { %v597_v55 = vsub.f32 %v595_v21, %v596_v25 }
 0x293   :  { %v604_v59 = vadd.f32 1e-05, %v597_v55 }
 0x295   :  { %2581 = vrsqrt.f32 %v604_v59 }
 0x29f   :  { %v2582_v61 = vpop.eup %2581 }
 0x2a0   :  { %v610_v3 = vmul.f32 %v2582_v61, %v602_v28  ;;  %v607_v6 = vmul.f32 %v2582_v61, %v599_v29  ;;  %v606_v19 = vmul.f32 %v2582_v61, %v598_v31  ;;  %v609_v18 = vmul.f32 %v2582_v61, %v601_v34 }
 0x2a1   :  { %v608_v4 = vmul.f32 %v2582_v61, %v600_v50  ;;  %v611_v43 = vmul.f32 %v2582_v61, %v603_v52 }
 0x2a2   :  { %v620_v46 = vmul.f32 %v2001_v58, %v607_v6  ;;  %v619_v32 = vmul.f32 %v2001_v58, %v606_v19  ;;  %v622_v33 = vmul.f32 %v2001_v58, %v609_v18  ;;  %v623_v27 = vmul.f32 %v2001_v58, %v610_v3  ;;  %v1167_v6 = vld [vmem:[%s3317_s15] sm:$0x3]  ;;  %v3118_v19 = vld [vmem:[%s3316_s4 + $0x8] sm:$0xff] }
 0x2a3   :  { %v621_v42 = vmul.f32 %v2001_v58, %v608_v4  ;;  %v624_v9 = vmul.f32 %v2001_v58, %v611_v43  ;;  %v1279_v18 = vld [vmem:[%s3318_s17] sm:$0xff] }
 0x2a4   :  { %v633_v30 = vadd.f32 %v2002_v2, %v620_v46  ;;  %v632_v44 = vadd.f32 %v2002_v2, %v619_v32  ;;  %v635_v45 = vadd.f32 %v2002_v2, %v622_v33  ;;  %v636_v49 = vadd.f32 %v2002_v2, %v623_v27  ;;  %v2020_v33 = vld [vmem:[%s3321_s16] ss:$0 sm:$0xff] }
 0x2a5   :  { %v634_v47 = vadd.f32 %v2002_v2, %v621_v42  ;;  %v637_v48 = vadd.f32 %v2002_v2, %v624_v9  ;;  %v1176_v27 = vmul.f32 %v2020_v33, %v2934_v23  ;;  %v2034_v9 = vld [vmem:[%s3322_s18] ss:$0 sm:$0xff] }
 0x2a6   :  { %2583 = vtanh.f32 %v633_v30  ;;  %v1175_v30 = vmul.f32 %v2020_v33, %v2926_v62 }
 0x2a7   :  { %2585 = vtanh.f32 %v632_v44 }
 0x2a8   :  { %2587 = vtanh.f32 %v635_v45 }
 0x2a9   :  { %2589 = vtanh.f32 %v634_v47 }
 0x2aa   :  { %2591 = vtanh.f32 %v637_v48 }
 0x2ab   :  { %2593 = vtanh.f32 %v636_v49 }
 0x2b0   :  { %v2584_v20 = vpop.eup %2583 }
 0x2b1   :  { %v2586_v21 = vpop.eup %2585  ;;  %v872_v25 = vmul.f32 %v2584_v20, %v3070_v35  ;;  %v988_v35 = vld [vmem:[%s3315_s11] sm:$0xff]  ;;  %v1177_v20 = vmul.f32 %v2020_v33, %v2937_v26 }
 0x2b2   :  { %v2588_v28 = vpop.eup %2587  ;;  %v871_v29 = vmul.f32 %v2586_v21, %v3072_v37  ;;  %2288 = vmatprep.subr.mxu0 %v988_v35  ;;  %v3108_v37 = vld [vmem:[%s3316_s4] sm:$0xff] }
 0x2b3   :  { %v2590_v31 = vpop.eup %2589  ;;  %v874_v34 = vmul.f32 %v2588_v28, %v3074_v63  ;;  %2305 = vmatprep.mubr.msk.f32.mxu1 %vm1070_vm4, %v3108_v37 }
 0x2b4   :  { %v2592_v50 = vpop.eup %2591  ;;  %v873_v52 = vmul.f32 %v2590_v31, %v3076_v53  ;;  %2279 = vmatprep.mubr.f32.mxu0 %v871_v29 }
 0x2b5   :  { %v2594_v55 = vpop.eup %2593  ;;  %v876_v59 = vmul.f32 %v2592_v50, %v3078_v60  ;;  %2280 = vmatmul.mubr.f32.vlgmr.msra.gmra.mrb[14].mxu0 %v872_v25 }
 0x2b6   :  { %v875_v61 = vmul.f32 %v2594_v55, %v3080_v22  ;;  %2282 = vmatprep.mubr.f32.mxu0 %v873_v52  ;;  %2289 = vmatpush3.msra.mxu0 %v988_v35 }
 0x2b9   :  { %2283 = vmatmul.mubr.f32.gmra.mrb[16].mxu0 %v874_v34 }
 0x2ba   :  { %2285 = vmatprep.mubr.f32.mxu0 %v875_v61 }
 0x2bd   :  { %2286 = vmatmul.mubr.f32.gmra.mrb[18].mxu0 %v876_v59 }
 0x2be   :  { %2290 = vmatprep.mubr.msk.f32.mxu0 %vm222_vm3, %v2744_v0 }
 0x2c1   :  { %2291 = vmatmul.mubr.msk.f32.vlgmr.msra.gmra.mrb[20].mxu0 %vm222_vm3, %v2749_v1 }
 0x2c2   :  { %2334 = vmatprep.mubr.msk.f32.mxu0 %vm102_vm0, %v2801_v12 }
 0x388   :  { %v2281_v0 = vpop.f32.mrb[14].mxu0 }
 0x389   :  { %v959_v63 = vpop.f32.mrb[15].mxu0 }
 0x38a   :  { %v2459_v53 = vpack.c.bf16 %v2281_v0, %v959_v63 }
 0x38c   :  { %v2284_v60 = vpop.f32.mrb[16].mxu0  ;;  %2460 = vmatprep.subr.bf16.mxu1 %v2459_v53 }
 0x38d   :  { %v969_v22 = vpop.f32.mrb[17].mxu0  ;;  %2462 = vmatpush3.bf16.msra.mxu1 %v2459_v53 }
 0x38e   :  { %v2463_v1 = vpack.c.bf16 %v2284_v60, %v969_v22 }
 0x390   :  { %v2287_v58 = vpop.f32.mrb[18].mxu0  ;;  %2464 = vmatprep.subr.bf16.mxu1 %v2463_v1 }
 0x391   :  { %v979_v12 = vpop.f32.mrb[19].mxu0  ;;  %2466 = vmatpush3.bf16.msra.mxu1 %v2463_v1 }
 0x392   :  { %v2467_v3 = vpack.c.bf16 %v2287_v58, %v979_v12 }
 0x394   :  { %2468 = vmatprep.subr.bf16.mxu1 %v2467_v3 }
 0x395   :  { %2470 = vmatpush3.bf16.msra.mxu1 %v2467_v3 }
 0x396   :  { %2308 = vmatprep.subr.msk.mxu1 %vm334_vm1, %v1167_v6 }
 0x398   :  { %2306 = vmatmul.mubr.msk.f32.vlgmr.msra.gmra.mrb[12].mxu1 %vm1070_vm4, %v3118_v19 }
 0x399   :  { %2309 = vmatpush3.msk.msra.mxu1 %vm334_vm1, %v1167_v6  ;;  %2310 = vmatprep.mubr.msk.f32.mxu1 %vm315_vm2, %v2786_v10  ;;  %v2292_v10 = vpop.f32.mrb[20].mxu0 }
 0x39a   :  { %2319 = vmatprep.subr.mxu1 %v1279_v18 }
 0x39c   :  { %2311 = vmatmul.mubr.msk.f32.vlgmr.msra.gmra.mrb[14].mxu1 %vm315_vm2, %v2794_v11  ;;  %v1061_v11 = vpop.f32.mrb[21].mxu0 }
 0x39d   :  { %2313 = vmatprep.mubr.msk.f32.mxu1 %vm315_vm2, %v2875_v38  ;;  %2320 = vmatpush3.msra.mxu1 %v1279_v18 }
 0x3a0   :  { %2314 = vmatmul.mubr.msk.f32.gmra.mrb[16].mxu1 %vm315_vm2, %v2882_v39  ;;  %v2019_v39 = vld [vmem:[%s3319_s12] ss:$0 sm:$0xff] }
 0x3a1   :  { %2316 = vmatprep.mubr.msk.f32.mxu1 %vm315_vm2, %v2889_v40 }
 0x3a4   :  { %2317 = vmatmul.mubr.msk.f32.gmra.mrb[18].mxu1 %vm315_vm2, %v2896_v41 }
 0x3a5   :  { %2321 = vmatprep.mubr.msk.f32.mxu1 %vm222_vm3, %v2957_v54 }
 0x3a8   :  { %2322 = vmatmul.mubr.msk.f32.vlgmr.msra.gmra.mrb[14].mxu1 %vm222_vm3, %v2962_v5 }
 0x3a9   :  { %2324 = vmatprep.mubr.msk.f32.mxu1 %vm222_vm3, %v2965_v56 }
 0x3ac   :  { %2325 = vmatmul.mubr.msk.f32.gmra.mrb[16].mxu1 %vm222_vm3, %v2973_v7 }
 0x3ad   :  { %2327 = vmatprep.mubr.msk.f32.mxu1 %vm222_vm3, %v2976_v8  ;;  %v1567_v8 = vld [vmem:[%s3320_s23] sm:$0xff] }
 0x3b0   :  { %2328 = vmatmul.mubr.msk.f32.gmra.mrb[18].mxu1 %vm222_vm3, %v2983_v24  ;;  %v1568_v24 = vld [vmem:[%s3320_s23 + $0x8] sm:$0xff] }
 0x3b1   :  { %v2475_v32 = vpack.c.bf16 %v1568_v24, %v1567_v8 }
 0x46b   :  { %v2307_v38 = vpop.f32.mrb[12].mxu1 }
 0x46c   :  { %v1149_v40 = vadd.f32 %v2307_v38, %v2292_v10  ;;  %v1143_v41 = vpop.f32.mrb[13].mxu1 }
 0x46d   :  { %v1144_v54 = vadd.f32 %v1143_v41, %v1061_v11 }
 0x46e   :  { %v1160_v5 = vadd.f32 %v2019_v39, %v1149_v40 }
 0x46f   :  { %v1159_v56 = vadd.f32 %v2019_v39, %v1144_v54 }
 0x470   :  { %vm1162_vm1 = vcmp.gt.f32.partialorder %v1160_v5, 0.0  ;;  %v1164_v7 = vmul.f32 0.01, %v1160_v5 }
 0x471   :  { %vm1161_vm2 = vcmp.gt.f32.partialorder %v1159_v56, 0.0  ;;  %v1163_v2 = vmul.f32 0.01, %v1159_v56 }
 0x472   :  { %v3160_v4 = vsel %vm1162_vm1, %v1160_v5, %v1164_v7 }
 0x473   :  { %v3162_v43 = vsel %vm1161_vm2, %v1159_v56, %v1163_v2 }
 0x474   :  { %v2471_v46 = vpack.c.bf16 %v3160_v4, %v3162_v43 }
 0x476   :  { %2472 = vmatprep.subr.bf16.mxu0 %v2471_v46 }
 0x477   :  { %2474 = vmatpush3.bf16.msra.mxu0 %v2471_v46 }
 0x478   :  { %2476 = vmatprep.subr.bf16.mxu0 %v2475_v32 }
 0x47a   :  { %2335 = vmatmul.mubr.msk.f32.vlgmr.msra.gmra.mrb[22].mxu0 %vm102_vm0, %v2806_v13  ;;  %v1178_v13 = vmul.f32 %v2020_v33, %v2947_v51 }
 0x47b   :  { %v2323_v42 = vpop.f32.mrb[14].mxu1  ;;  %2337 = vmatprep.mubr.msk.f32.mxu0 %vm102_vm0, %v2811_v14  ;;  %2478 = vmatpush3.bf16.msra.mxu0 %v2475_v32 }
 0x47c   :  { %v2539_v44 = vadd.f32 %v2323_v42, %v1176_v27  ;;  %v1346_v45 = vpop.f32.mrb[15].mxu1 }
 0x47d   :  { %v2540_v47 = vadd.f32 %v1346_v45, %v1175_v30 }
 0x47e   :  { %v3178_v48 = vadd.f32 %v2539_v44, %v2034_v9  ;;  %2338 = vmatmul.mubr.msk.f32.gmra.mrb[24].mxu0 %vm102_vm0, %v2822_v15  ;;  %v1180_v15 = vmul.f32 %v2020_v33, %v2953_v36 }
 0x47f   :  { %v1388_v23 = vadd.f32 %v2540_v47, %v2034_v9  ;;  %v2326_v49 = vpop.f32.mrb[16].mxu1  ;;  %2340 = vmatprep.mubr.msk.f32.mxu0 %vm102_vm0, %v2827_v16  ;;  %v1179_v16 = vmul.f32 %v2020_v33, %v2950_v57 }
 0x480   :  { %v1406_v14 = vmul.f32 %v3178_v48, %v3178_v48  ;;  %v2541_v62 = vadd.f32 %v2326_v49, %v1178_v13  ;;  %v1356_v21 = vpop.f32.mrb[17].mxu1 }
 0x481   :  { %v1394_v25 = vadd.f32 %v3178_v48, %v1388_v23  ;;  %v1405_v28 = vmul.f32 %v1388_v23, %v1388_v23  ;;  %v2542_v29 = vadd.f32 %v1356_v21, %v1177_v20 }
 0x482   :  { %v1391_v31 = vadd.f32 %v2541_v62, %v2034_v9  ;;  %2341 = vmatmul.mubr.msk.f32.gmra.mrb[26].mxu0 %vm102_vm0, %v2836_v17  ;;  %v1690_v62 = vld [vmem:[%s3323_s24 + $0x10] sm:$0xff] }
 0x483   :  { %v1411_v51 = vadd.f32 %v1406_v14, %v1405_v28  ;;  %v1390_v26 = vadd.f32 %v2542_v29, %v2034_v9  ;;  %v2329_v34 = vpop.f32.mrb[18].mxu1  ;;  %v1692_v29 = vld [vmem:[%s3323_s24 + $0x20] sm:$0xff] }
 0x484   :  { %v2543_v50 = vadd.f32 %v2329_v34, %v1180_v15  ;;  %v1366_v52 = vpop.f32.mrb[19].mxu1  ;;  %v1408_v35 = vmul.f32 %v1391_v31, %v1391_v31 }
 0x485   :  { %v1395_v55 = vadd.f32 %v1394_v25, %v1390_v26  ;;  %v1407_v59 = vmul.f32 %v1390_v26, %v1390_v26  ;;  %v2544_v61 = vadd.f32 %v1366_v52, %v1179_v16  ;;  %v1691_v25 = vld [vmem:[%s3323_s24 + $0x18] sm:$0xff]  ;;  %v1696_v16 = vld [vmem:[%s3323_s24 + $0x40] sm:$0xff] }
 0x486   :  { %v1393_v63 = vadd.f32 %v2543_v50, %v2034_v9  ;;  %v2483_v28 = vpack.c.bf16 %v1691_v25, %v1690_v62  ;;  %v1697_v50 = vld [vmem:[%s3323_s24 + $0x48] sm:$0xff] }
 0x487   :  { %v1412_v0 = vadd.f32 %v1411_v51, %v1407_v59  ;;  %v1392_v53 = vadd.f32 %v2544_v61, %v2034_v9  ;;  %v1396_v60 = vadd.f32 %v1395_v55, %v1391_v31  ;;  %v1694_v51 = vld [vmem:[%s3323_s24 + $0x30] sm:$0xff]  ;;  %v2495_v52 = vpack.c.bf16 %v1697_v50, %v1696_v16  ;;  %v1699_v59 = vld [vmem:[%s3323_s24 + $0x58] sm:$0xff] }
 0x488   :  { %v1410_v58 = vmul.f32 %v1393_v63, %v1393_v63  ;;  %v1698_v55 = vld [vmem:[%s3323_s24 + $0x50] sm:$0xff] }
 0x489   :  { %v1397_v22 = vadd.f32 %v1396_v60, %v1392_v53  ;;  %v1409_v1 = vmul.f32 %v1392_v53, %v1392_v53  ;;  %v1413_v17 = vadd.f32 %v1412_v0, %v1408_v35  ;;  %v2499_v61 = vpack.c.bf16 %v1699_v59, %v1698_v55  ;;  %v1700_v35 = vld [vmem:[%s3323_s24 + $0x60] sm:$0xff]  ;;  %v1701_v0 = vld [vmem:[%s3323_s24 + $0x68] sm:$0xff] }
 0x48b   :  { %v1398_v36 = vadd.f32 %v1397_v22, %v1393_v63  ;;  %v1414_v12 = vadd.f32 %v1413_v17, %v1409_v1 }
 0x48d   :  { %v1399_v3 = vrot.slane %v1398_v36, 4  ;;  %v1415_v6 = vadd.f32 %v1414_v12, %v1410_v58  ;;  %v1703_v12 = vld [vmem:[%s3323_s24 + $0x78] sm:$0xff] }
 0x48f   :  { %v1400_v18 = vadd.f32 %v1399_v3, %v1398_v36  ;;  %v1416_v57 = vrot.slane %v1415_v6, 4  ;;  %v1702_v36 = vld [vmem:[%s3323_s24 + $0x70] sm:$0xff] }
 0x490   :  { %v2507_v3 = vpack.c.bf16 %v1703_v12, %v1702_v36 }
 0x491   :  { %v1401_v10 = vrot.slane %v1400_v18, 2  ;;  %v1417_v11 = vadd.f32 %v1416_v57, %v1415_v6  ;;  %v1799_v6 = vld [vmem:[%s3324_s21] sm:$0xff] }
 0x492   :  { %v2035_v57 = vld [vmem:[%s3325_s19] ss:$0 sm:$0xff] }
 0x493   :  { %v1402_v38 = vadd.f32 %v1401_v10, %v1400_v18  ;;  %v1418_v39 = vrot.slane %v1417_v11, 2  ;;  %v1800_v18 = vld [vmem:[%s3324_s21 + $0x8] sm:$0xff] }
 0x495   :  { %v1403_v40 = vrot.slane %v1402_v38, 1  ;;  %v1419_v41 = vadd.f32 %v1418_v39, %v1417_v11  ;;  %v2036_v11 = vld [vmem:[%s3326_s20] ss:$0 sm:$0xff] }
 0x497   :  { %v1404_v54 = vadd.f32 %v1403_v40, %v1402_v38  ;;  %v1420_v5 = vrot.slane %v1419_v41, 1 }
 0x499   :  { %v1421_v56 = vadd.f32 %v1420_v5, %v1419_v41  ;;  %v1422_v7 = vmul.f32 0.020833334, %v1404_v54 }
 0x49b   :  { %v1423_v2 = vmul.f32 0.020833334, %v1421_v56  ;;  %v1424_v8 = vmul.f32 %v1422_v7, %v1422_v7  ;;  %v1430_v24 = vsub.f32 %v1392_v53, %v1422_v7  ;;  %v1427_v46 = vsub.f32 %v3178_v48, %v1422_v7  ;;  %v1688_v48 = vld [vmem:[%s3323_s24] sm:$0xff] }
 0x49c   :  { %v1426_v32 = vsub.f32 %v1388_v23, %v1422_v7  ;;  %v1429_v33 = vsub.f32 %v1391_v31, %v1422_v7  ;;  %v1428_v27 = vsub.f32 %v1390_v26, %v1422_v7  ;;  %v1431_v42 = vsub.f32 %v1393_v63, %v1422_v7  ;;  %v1689_v23 = vld [vmem:[%s3323_s24 + $0x8] sm:$0xff]  ;;  %v1695_v26 = vld [vmem:[%s3323_s24 + $0x38] sm:$0xff] }
 0x49d   :  { %v1425_v9 = vsub.f32 %v1423_v2, %v1424_v8  ;;  %v2479_v21 = vpack.c.bf16 %v1689_v23, %v1688_v48  ;;  %v1693_v31 = vld [vmem:[%s3323_s24 + $0x28] sm:$0xff]  ;;  %v2491_v34 = vpack.c.bf16 %v1695_v26, %v1694_v51  ;;  %v2503_v63 = vpack.c.bf16 %v1701_v0, %v1700_v35 }
 0x49e   :  { %v2487_v15 = vpack.c.bf16 %v1693_v31, %v1692_v29 }
 0x49f   :  { %v1432_v30 = vadd.f32 1e-05, %v1425_v9  ;;  %2480 = vmatprep.subr.bf16.mxu1 %v2479_v21 }
 0x4a0   :  { %2482 = vmatpush3.bf16.msra.mxu1 %v2479_v21 }
 0x4a1   :  { %2595 = vrsqrt.f32 %v1432_v30  ;;  %2484 = vmatprep.subr.bf16.mxu1 %v2483_v28 }
 0x4a4   :  { %2486 = vmatpush3.bf16.msra.mxu1 %v2483_v28 }
 0x4a5   :  { %2488 = vmatprep.subr.bf16.mxu1 %v2487_v15 }
 0x4a8   :  { %2490 = vmatpush3.bf16.msra.mxu1 %v2487_v15 }
 0x4a9   :  { %2492 = vmatprep.subr.bf16.mxu1 %v2491_v34 }
 0x4ab   :  { %v2596_v44 = vpop.eup %2595 }
 0x4ac   :  { %v3194_v45 = vmul.f32 %v2596_v44, %v1430_v24  ;;  %v3196_v47 = vmul.f32 %v2596_v44, %v1427_v46  ;;  %v3198_v13 = vmul.f32 %v2596_v44, %v1426_v32  ;;  %v3200_v49 = vmul.f32 %v2596_v44, %v1429_v33  ;;  %2494 = vmatpush3.bf16.msra.mxu1 %v2491_v34 }
 0x4ad   :  { %v3202_v20 = vmul.f32 %v2596_v44, %v1428_v27  ;;  %v3204_v14 = vmul.f32 %v2596_v44, %v1431_v42  ;;  %2496 = vmatprep.subr.bf16.mxu1 %v2495_v52 }
 0x4ae   :  { %v1448_v10 = vmul.f32 %v2035_v57, %v3196_v47  ;;  %v1447_v38 = vmul.f32 %v2035_v57, %v3198_v13  ;;  %v1450_v40 = vmul.f32 %v2035_v57, %v3200_v49  ;;  %v1451_v7 = vmul.f32 %v2035_v57, %v3194_v45 }
 0x4af   :  { %v1449_v54 = vmul.f32 %v2035_v57, %v3202_v20  ;;  %v1452_v56 = vmul.f32 %v2035_v57, %v3204_v14 }
 0x4b0   :  { %2498 = vmatpush3.bf16.msra.mxu1 %v2495_v52  ;;  %v1461_v39 = vadd.f32 %v2036_v11, %v1448_v10  ;;  %v1460_v41 = vadd.f32 %v2036_v11, %v1447_v38  ;;  %v1463_v5 = vadd.f32 %v2036_v11, %v1450_v40  ;;  %v1464_v24 = vadd.f32 %v2036_v11, %v1451_v7 }
 0x4b1   :  { %2500 = vmatprep.subr.bf16.mxu1 %v2499_v61  ;;  %v1462_v2 = vadd.f32 %v2036_v11, %v1449_v54  ;;  %v1465_v8 = vadd.f32 %v2036_v11, %v1452_v56 }
 0x4b2   :  { %2597 = vtanh.f32 %v1461_v39 }
 0x4b3   :  { %2599 = vtanh.f32 %v1460_v41 }
 0x4b4   :  { %2502 = vmatpush3.bf16.msra.mxu1 %v2499_v61  ;;  %2601 = vtanh.f32 %v1463_v5 }
 0x4b5   :  { %2504 = vmatprep.subr.bf16.mxu1 %v2503_v63  ;;  %2603 = vtanh.f32 %v1462_v2 }
 0x4b6   :  { %2605 = vtanh.f32 %v1465_v8 }
 0x4b7   :  { %2607 = vtanh.f32 %v1464_v24 }
 0x4b8   :  { %2506 = vmatpush3.bf16.msra.mxu1 %v2503_v63 }
 0x4b9   :  { %2508 = vmatprep.subr.bf16.mxu1 %v2507_v3 }
 0x4bc   :  { %2510 = vmatpush3.bf16.msra.mxu1 %v2507_v3  ;;  %v2598_v46 = vpop.eup %2597 }
 0x4bd   :  { %v2600_v33 = vpop.eup %2599 }
 0x4be   :  { %v2602_v30 = vpop.eup %2601 }
 0x4bf   :  { %v2604_v47 = vpop.eup %2603 }
 0x4c0   :  { %v2606_v20 = vpop.eup %2605 }
 0x4c1   :  { %v2608_v48 = vpop.eup %2607 }
 0x54d   :  { %v2336_v53 = vpop.f32.mrb[22].mxu0 }
 0x54e   :  { %v1538_v60 = vpop.f32.mrb[23].mxu0 }
 0x54f   :  { %2347 = vmatprep.mubr.msk.f32.mxu0 %vm102_vm0, %v1538_v60 }
 0x550   :  { %2348 = vmatmul.mubr.msk.f32.vlgmr.msra.gmra.mrb[28].mxu0 %vm102_vm0, %v2336_v53 }
 0x551   :  { %v2339_v22 = vpop.f32.mrb[24].mxu0 }
 0x552   :  { %v1548_v1 = vpop.f32.mrb[25].mxu0 }
 0x553   :  { %2350 = vmatprep.mubr.msk.f32.mxu0 %vm102_vm0, %v1548_v1 }
 0x554   :  { %2351 = vmatmul.mubr.msk.f32.gmra.mrb[30].mxu0 %vm102_vm0, %v2339_v22  ;;  %v2609_v22 = vld [vmem:[%s3344_s13 + $0x8] sm:$0xff] }
 0x555   :  { %v2342_v17 = vpop.f32.mrb[26].mxu0 }
 0x556   :  { %v1558_v58 = vpop.f32.mrb[27].mxu0 }
 0x557   :  { %2353 = vmatprep.mubr.msk.f32.mxu0 %vm102_vm0, %v1558_v58 }
 0x558   :  { %2354 = vmatmul.mubr.msk.f32.gmra.mrb[32].mxu0 %vm102_vm0, %v2342_v17  ;;  %v2610_v17 = vld [vmem:[%s3344_s13] sm:$0xff] }
 0x559   :  { %2416 = vmatprep.mubr.msk.f32.mxu0 %vm1070_vm4, %v3108_v37  ;;  %v2511_v37 = vpack.c.bf16 %v1800_v18, %v1799_v6 }
 0x55b   :  { %2512 = vmatprep.subr.bf16.mxu1 %v2511_v37 }
 0x623   :  { %v2349_v32 = vpop.f32.mrb[28].mxu0 }
 0x624   :  { %v1683_v27 = vmul.f32 %v2598_v46, %v2349_v32  ;;  %v1653_v42 = vpop.f32.mrb[29].mxu0 }
 0x625   :  { %v1682_v9 = vmul.f32 %v2600_v33, %v1653_v42 }
 0x627   :  { %v2352_v44 = vpop.f32.mrb[30].mxu0  ;;  %2388 = vmatprep.mubr.f32.mxu1 %v1682_v9 }
 0x628   :  { %v1685_v13 = vmul.f32 %v2602_v30, %v2352_v44  ;;  %v1663_v45 = vpop.f32.mrb[31].mxu0  ;;  %2389 = vmatmul.mubr.f32.vlgmr.msra.gmra.mrb[20].mxu1 %v1683_v27 }
 0x629   :  { %v1684_v49 = vmul.f32 %v2604_v47, %v1663_v45  ;;  %2514 = vmatpush3.bf16.msra.mxu1 %v2511_v37 }
 0x62b   :  { %v2355_v14 = vpop.f32.mrb[32].mxu0  ;;  %2391 = vmatprep.mubr.f32.mxu1 %v1684_v49 }
 0x62c   :  { %v1687_v23 = vmul.f32 %v2606_v20, %v2355_v14  ;;  %v1673_v62 = vpop.f32.mrb[33].mxu0  ;;  %2392 = vmatmul.mubr.f32.gmra.mrb[22].mxu1 %v1685_v13 }
 0x62d   :  { %v1686_v21 = vmul.f32 %v2608_v48, %v1673_v62 }
 0x62f   :  { %2394 = vmatprep.mubr.f32.mxu1 %v1686_v21 }
 0x630   :  { %2395 = vmatmul.mubr.f32.gmra.mrb[24].mxu1 %v1687_v23 }
 0x631   :  { %2401 = vmatprep.mubr.msk.f32.mxu1 %vm102_vm0, %v3162_v43  ;;  %v2053_v43 = vld [vmem:[%s3327_s22] ss:$0 sm:$0xff] }
 0x634   :  { %2402 = vmatmul.mubr.msk.f32.vlgmr.msra.gmra.mrb[26].mxu1 %vm102_vm0, %v3160_v4 }
 0x6fb   :  { %v2390_v25 = vpop.f32.mrb[20].mxu1 }
 0x6fc   :  { %v1770_v28 = vpop.f32.mrb[21].mxu1 }
 0x6fd   :  { %v2515_v29 = vpack.c.bf16 %v2390_v25, %v1770_v28 }
 0x6ff   :  { %v2393_v31 = vpop.f32.mrb[22].mxu1  ;;  %2516 = vmatprep.subr.bf16.mxu0 %v2515_v29 }
 0x700   :  { %v1780_v15 = vpop.f32.mrb[23].mxu1  ;;  %2518 = vmatpush3.bf16.msra.mxu0 %v2515_v29 }
 0x701   :  { %v2519_v51 = vpack.c.bf16 %v2393_v31, %v1780_v15 }
 0x703   :  { %v2396_v26 = vpop.f32.mrb[24].mxu1  ;;  %2520 = vmatprep.subr.bf16.mxu0 %v2519_v51 }
 0x704   :  { %v1790_v34 = vpop.f32.mrb[25].mxu1  ;;  %2522 = vmatpush3.bf16.msra.mxu0 %v2519_v51 }
 0x705   :  { %v2523_v16 = vpack.c.bf16 %v2396_v26, %v1790_v34 }
 0x707   :  { %v2403_v50 = vpop.f32.mrb[26].mxu1  ;;  %2524 = vmatprep.subr.bf16.mxu0 %v2523_v16 }
 0x708   :  { %v1873_v52 = vpop.f32.mrb[27].mxu1  ;;  %2526 = vmatpush3.bf16.msra.mxu0 %v2523_v16 }
 0x70b   :  { %2417 = vmatmul.mubr.msk.f32.vlgmr.msra.gmra.mrb[34].mxu0 %vm1070_vm4, %v3118_v19 }
 0x7de   :  { %v2418_v4 = vpop.f32.mrb[34].mxu0 }
 0x7df   :  { %v1954_v55 = vadd.f32 %v2418_v4, %v2403_v50  ;;  %v1948_v59 = vpop.f32.mrb[35].mxu0 }
 0x7e0   :  { %v1949_v61 = vadd.f32 %v1948_v59, %v1873_v52 }
 0x7e1   :  { %v1965_v35 = vadd.f32 %v2053_v43, %v1954_v55 }
 0x7e2   :  { %v1964_v0 = vadd.f32 %v2053_v43, %v1949_v61 }
 0x7e3   :  { %vm1967_vm0 = vcmp.gt.f32.partialorder %v1965_v35, 0.0  ;;  %v1969_v63 = vmul.f32 0.01, %v1965_v35 }
 0x7e4   :  { %vm1966_vm5 = vcmp.gt.f32.partialorder %v1964_v0, 0.0  ;;  %v1968_v53 = vmul.f32 0.01, %v1964_v0 }
 0x7e5   :  { %v1971_v60 = vsel %vm1967_vm0, %v1965_v35, %v1969_v63 }
 0x7e6   :  { %v1973_v19 = vadd.f32 %v2609_v22, %v1971_v60  ;;  %v1970_v1 = vsel %vm1966_vm5, %v1964_v0, %v1968_v53 }
 0x7e7   :  { %v1972_v58 = vadd.f32 %v2610_v17, %v1970_v1 }
 0x7e8   :  { %1975 = vst.msk [vmem:[%s3328_s25 + $0x8] sm:$0xff] %vm222_vm3, %v1973_v19 }
 0x7e9   :  { %1974 = vst.msk [vmem:[%s3328_s25] sm:$0xff] %vm222_vm3, %v1972_v58 }

</bundles_post_ra>
